<compile_context>
chip_gen: v5e
topology: v5e:2x2
jax: 0.10.0
libtpu: 0.0.40
codegen_flags: <defaults>
</compile_context>

<pallas_src>
import functools
import math

import jax
import jax.numpy as jnp
import numpy as np
from jax import lax
from jax.experimental import pallas as pl
from jax.experimental.pallas import tpu as pltpu


# ----------------------------------------------------------------------------- kernels

def _backbone_kernel(x_ref, we_ref, be_ref, w1_ref, b1_ref, w2_ref, b2_ref,
                     w3_ref, b3_ref, o_ref):
    """Fused patch-embed + 3 MLP 'intermediate layers'. Only f3 (the consumed level)
    is written back to HBM; t0/f1/f2 live entirely in vregs/VMEM."""
    t0 = jnp.dot(x_ref[...], we_ref[...],
                 preferred_element_type=jnp.float32) + be_ref[...]
    f1 = jnp.maximum(jnp.dot(t0.astype(jnp.bfloat16), w1_ref[...],
                             preferred_element_type=jnp.float32) + b1_ref[...], 0.0)
    f2 = jnp.maximum(jnp.dot(f1.astype(jnp.bfloat16), w2_ref[...],
                             preferred_element_type=jnp.float32) + b2_ref[...], 0.0)
    f3 = jnp.maximum(jnp.dot(f2.astype(jnp.bfloat16), w3_ref[...],
                             preferred_element_type=jnp.float32) + b3_ref[...], 0.0)
    o_ref[...] = f3.astype(o_ref.dtype)


def _predictor_kernel(m_ref, rf_ref, qf_ref, o_ref, *, scale):
    """Fused X-Decoder-style spatial predictor: mask-pooled queries + cross-correlation.
    Batched dot_general avoids materializing a (B, D, N) transpose in HBM."""
    m = m_ref[...]                                              # (B, Q, N) f32
    rf = rf_ref[...]                                            # (B, N, D) bf16
    qf = qf_ref[...]                                            # (B, N, D) bf16
    # (B,Q,N) @ (B,N,D) -> (B,Q,D)
    qe = lax.dot_general(m.astype(jnp.bfloat16), rf,
                         (((2,), (1,)), ((0,), (0,))),
                         preferred_element_type=jnp.float32)
    denom = jnp.sum(m, axis=-1, keepdims=True) + 1e-6
    qe = qe / denom
    # (B,Q,D) . (B,N,D)^T -> (B,Q,N), contraction on D (no explicit transpose).
    logits = lax.dot_general(qe.astype(jnp.bfloat16), qf,
                             (((2,), (2,)), ((0,), (0,))),
                             preferred_element_type=jnp.float32)
    o_ref[...] = (logits * scale).astype(o_ref.dtype)


def _interp_compute(m, ah, aw):
    """Bilinear upsample of G mask tiles: out[g] = Ah @ m[g] @ Aw^T  (all in VMEM).

    m: (G, Hf, Wf) f32, ah: (Ht, Hf) f32, aw: (Wt, Wf) f32  ->  (G, Ht, Wt) f32
    """
    G, Hf, Wf = m.shape
    Ht = ah.shape[0]
    Wt = aw.shape[0]
    awb = jnp.broadcast_to(aw[None], (G, Wt, Wf))
    ahb = jnp.broadcast_to(ah[None], (G, Ht, Hf))
    y = lax.dot_general(m, awb, (((2,), (2,)), ((0,), (0,))),
                        preferred_element_type=jnp.float32)       # (G, Hf, Wt)
    y = lax.dot_general(ahb, y, (((2,), (1,)), ((0,), (0,))),
                        preferred_element_type=jnp.float32)       # (G, Ht, Wt)
    return y


def _interp_kernel(m_ref, ah_ref, aw_ref, o_ref):
    """Test path: fused bilinear interpolation, single kernel, no HBM intermediates."""
    B, Q, Hf, Wf = m_ref.shape
    m = m_ref[...].astype(jnp.float32).reshape(B * Q, Hf, Wf)
    y = _interp_compute(m, ah_ref[...], aw_ref[...])
    o_ref[...] = y.reshape(o_ref.shape).astype(o_ref.dtype)


def _interp_loss_kernel(m_ref, ah_ref, aw_ref, tgt_ref, o_ref):
    """Train path: bilinear upsample fused with
        sum_{id<5}  Dice(sigmoid(pred[:,id]), tgt[:,id]) * 0.7
                  + BCEWithLogits(pred[:,id], tgt[:,id]) * 0.3
    The upsampled prediction never leaves VMEM; the scalar loss goes to SMEM."""
    B, Q, Hf, Wf = m_ref.shape
    Ht = tgt_ref.shape[-2]
    Wt = tgt_ref.shape[-1]

    m = m_ref[...].astype(jnp.float32).reshape(B * Q, Hf, Wf)
    pred = _interp_compute(m, ah_ref[...], aw_ref[...])           # (B*Q, Ht, Wt)
    x = pred.reshape(B, Q, Ht, Wt)
    t = tgt_ref[...].astype(jnp.float32)
    s = jax.nn.sigmoid(x)

    # Dice (per channel, squared-denominator form, smooth = 1e-5).
    # TODO(synk): DiceLoss(n_classes=1) implementation not shown in the reference; standard form used.
    inter = jnp.sum(s * t, axis=(0, 2, 3))
    zsum = jnp.sum(s * s, axis=(0, 2, 3))
    ysum = jnp.sum(t * t, axis=(0, 2, 3))
    dice = 1.0 - (2.0 * inter + 1e-5) / (zsum + ysum + 1e-5)

    # BCEWithLogitsLoss (mean reduction, per channel), numerically stable form.
    bce_el = jnp.maximum(x, 0.0) - x * t + jnp.log1p(jnp.exp(-jnp.abs(x)))
    bce = jnp.mean(bce_el, axis=(0, 2, 3))

    o_ref[0, 0] = jnp.sum(dice * 0.7 + bce * 0.3)


# --------------------------------------------------------------------------- wrappers

def pallas_backbone(x_flat, we, be, w1, b1, w2, b2, w3, b3):
    """Fused backbone: (M, Kp) bf16 tokens -> (M, D) bf16 final features.

    Tiled over M rows with "parallel" semantics so the same kernel scales to real
    SEEM shapes (v7x megacore / 64 MiB VMEM); at toy sizes it's a single grid step.
    """
    M, Kp = x_flat.shape
    D = we.shape[1]
    tm = M if M <= 512 else 512
    assert M % tm == 0, "row count must divide the tile size"

    def _const(shape):
        return pl.BlockSpec(shape, lambda i: (0, 0))

    return pl.pallas_call(
        _backbone_kernel,
        out_shape=jax.ShapeDtypeStruct((M, D), jnp.bfloat16),
        grid=(M // tm,),
        in_specs=[pl.BlockSpec((tm, Kp), lambda i: (i, 0)),
                  _const((Kp, D)), _const((1, D)),
                  _const((D, D)), _const((1, D)),
                  _const((D, D)), _const((1, D)),
                  _const((D, D)), _const((1, D))],
        out_specs=pl.BlockSpec((tm, D), lambda i: (i, 0)),
        compiler_params=pltpu.CompilerParams(dimension_semantics=("parallel",)),
    )(x_flat, we, be, w1, b1, w2, b2, w3, b3)


def pallas_predictor(mask_ds, ref_feat, q_feat):
    """Single fused predictor kernel: (B,Q,N) masks, (B,N,D) features -> (B,Q,N) logits."""
    B, Q, N = mask_ds.shape
    D = ref_feat.shape[-1]
    scale = 1.0 / math.sqrt(D)
    return pl.pallas_call(
        functools.partial(_predictor_kernel, scale=scale),
        out_shape=jax.ShapeDtypeStruct((B, Q, N), jnp.float32),
        grid=(1,),
        in_specs=[pl.BlockSpec((B, Q, N), lambda i: (0, 0, 0)),
                  pl.BlockSpec((B, N, D), lambda i: (0, 0, 0)),
                  pl.BlockSpec((B, N, D), lambda i: (0, 0, 0))],
        out_specs=pl.BlockSpec((B, Q, N), lambda i: (0, 0, 0)),
    )(mask_ds.astype(jnp.float32), ref_feat, q_feat)


def pallas_interpolate(masks, ah, aw):
    """Test path: F.interpolate(..., bilinear, align_corners=True) in one kernel."""
    B, Q, Hf, Wf = masks.shape
    Ht, Wt = ah.shape[0], aw.shape[0]
    return pl.pallas_call(
        _interp_kernel,
        out_shape=jax.ShapeDtypeStruct((B, Q, Ht, Wt), jnp.float32),
        grid=(1,),
        in_specs=[pl.BlockSpec((B, Q, Hf, Wf), lambda i: (0, 0, 0, 0)),
                  pl.BlockSpec((Ht, Hf), lambda i: (0, 0)),
                  pl.BlockSpec((Wt, Wf), lambda i: (0, 0))],
        out_specs=pl.BlockSpec((B, Q, Ht, Wt), lambda i: (0, 0, 0, 0)),
    )(masks.astype(jnp.float32), ah, aw)


def pallas_interp_seg_loss(masks, ah, aw, targets):
    """Train path: bilinear upsample + Dice/BCE loss fused; scalar returned via SMEM."""
    B, Q, Hf, Wf = masks.shape
    Ht, Wt = ah.shape[0], aw.shape[0]
    out = pl.pallas_call(
        _interp_loss_kernel,
        out_shape=jax.ShapeDtypeStruct((1, 1), jnp.float32),
        grid=(1,),
        in_specs=[pl.BlockSpec((B, Q, Hf, Wf), lambda i: (0, 0, 0, 0)),
                  pl.BlockSpec((Ht, Hf), lambda i: (0, 0)),
                  pl.BlockSpec((Wt, Wf), lambda i: (0, 0)),
                  pl.BlockSpec((B, Q, Ht, Wt), lambda i: (0, 0, 0, 0))],
        out_specs=pl.BlockSpec(memory_space=pltpu.MemorySpace.SMEM),
    )(masks.astype(jnp.float32), ah, aw, targets.astype(jnp.float32))
    return out[0, 0]


# ------------------------------------------------------------------------------- glue

def _bilinear_matrix(out_size, in_size):
    """Interpolation matrix A (out, in) matching F.interpolate(mode='bilinear', align_corners=True)."""
    if out_size == 1:
        src = np.zeros((1,), np.float64)
    else:
        src = np.arange(out_size, dtype=np.float64) * (in_size - 1) / (out_size - 1)
    i0 = np.clip(np.floor(src).astype(np.int64), 0, in_size - 1)
    i1 = np.clip(i0 + 1, 0, in_size - 1)
    w = src - i0
    A = np.zeros((out_size, in_size), np.float32)
    A[np.arange(out_size), i0] += (1.0 - w).astype(np.float32)
    A[np.arange(out_size), i1] += w.astype(np.float32)
    return jnp.asarray(A)


def _pad_to_divisibility(x, d):
    """ImageList.from_tensors(..., size_divisibility): zero-pad H, W up to a multiple of d."""
    B, C, H, W = x.shape
    Hp = -(-H // d) * d
    Wp = -(-W // d) * d
    if Hp == H and Wp == W:
        return x
    return jnp.pad(x, ((0, 0), (0, 0), (0, Hp - H), (0, Wp - W)))


def _patchify(x, p):
    """NCHW image -> patch tokens (B, N, C*p*p)."""
    B, C, H, W = x.shape
    x = x.reshape(B, C, H // p, p, W // p, p).transpose(0, 2, 4, 1, 3, 5)
    return x.reshape(B, (H // p) * (W // p), C * p * p)


# ----------------------------------------------------------------------------- model

class SEEMModelPallas:
    """Synthetic SEEM_Model: backbone + spatial-task predictor + Dice/BCE loss, Pallas hot path."""

    def __init__(self, key, *, in_ch=3, img_size=32, patch=8, embed_dim=128,
                 num_masks=5, size_divisibility=32):
        self.patch = patch
        self.embed_dim = embed_dim          # 128 -> every matmul output is lane-dense
        self.num_masks = num_masks
        self.size_divisibility = size_divisibility
        self.task_switch = {"spatial": True}
        # buffers registered by the torch module (unused in this forward, kept for fidelity)
        self.pixel_mean = jnp.asarray([123.675, 116.28, 103.53], jnp.float32).reshape(-1, 1, 1)
        self.pixel_std = jnp.asarray([58.395, 57.12, 57.375], jnp.float32).reshape(-1, 1, 1)
        self.dilation_kernel = jnp.ones((1, 1, 3, 3), jnp.float32)

        keys = jax.random.split(key, 4)
        d = embed_dim
        pdim = in_ch * patch * patch
        s = 0.02
        # Weights stored bf16 (MXU-native on v5e/v6e/v7x); biases stay f32 for VPU math.
        self.W_embed = (s * jax.random.normal(keys[0], (pdim, d), jnp.float32)).astype(jnp.bfloat16)
        self.b_embed = jnp.zeros((1, d), jnp.float32)
        self.W1 = (s * jax.random.normal(keys[1], (d, d), jnp.float32)).astype(jnp.bfloat16)
        self.b1 = jnp.zeros((1, d), jnp.float32)
        self.W2 = (s * jax.random.normal(keys[2], (d, d), jnp.float32)).astype(jnp.bfloat16)
        self.b2 = jnp.zeros((1, d), jnp.float32)
        self.W3 = (s * jax.random.normal(keys[3], (d, d), jnp.float32)).astype(jnp.bfloat16)
        self.b3 = jnp.zeros((1, d), jnp.float32)

    # ---- backbone.get_intermediate_layers(x, 3): only the last level is consumed,
    #      so the fused kernel returns just f3 (identical to features[-1] before).
    def _backbone(self, images):
        B2, C, H, W = images.shape
        p = self.patch
        tokens = _patchify(images.astype(jnp.float32), p)         # (B2, N, C*p*p)  [glue]
        N = tokens.shape[1]
        flat = tokens.reshape(B2 * N, -1).astype(jnp.bfloat16)
        f3 = pallas_backbone(flat, self.W_embed, self.b_embed,
                             self.W1, self.b1, self.W2, self.b2, self.W3, self.b3)
        return f3.reshape(B2, N, self.embed_dim), (H // p, W // p)

    # ---- sem_seg_head.predictor(ref_information, query_information, task='spatial')
    def _predictor(self, ref_feat, ref_masks, q_feat, grid_hw):
        # TODO(synk): multi-scale X-Decoder fusion not specified; last feature level is used.
        B, N, D = ref_feat.shape
        Hf, Wf = grid_hw
        Q = self.num_masks
        p = self.patch

        # Downsample the reference masks onto the feature grid (average pool over patches). [glue]
        m = ref_masks.reshape(B * Q, 1, ref_masks.shape[-2], ref_masks.shape[-1])
        m_tok = _patchify(m.astype(jnp.float32), p)               # (B*Q, N, p*p)
        mask_ds = m_tok.mean(-1).reshape(B, Q, N)                 # (B, Q, N)

        # Mask-pool + cross-correlation + 1/sqrt(D) scale, all in one Pallas kernel.
        logits = pallas_predictor(mask_ds, ref_feat, q_feat)      # (B, Q, N)
        return {"predictions_mask": logits.reshape(B, Q, Hf, Wf)}

    def forward_seg(self, batched_inputs, targets, reference_img, ref_mask,
                    area_list=None, mode="train"):
        images = _pad_to_divisibility(batched_inputs, self.size_divisibility)
        ref_images = _pad_to_divisibility(reference_img, self.size_divisibility)
        ref_masks = _pad_to_divisibility(ref_mask, self.size_divisibility)

        # Both backbone passes (query images + reference images) in ONE fused call.
        B = images.shape[0]
        stacked = jnp.concatenate([images, ref_images], axis=0).astype(jnp.float32)
        feats, grid_hw = self._backbone(stacked)
        q_feat, ref_feat = feats[:B], feats[B:]

        outputs = self._predictor(ref_feat, ref_masks, q_feat, grid_hw)
        masks = outputs["predictions_mask"]                       # (B, Q, Hf, Wf)

        Ht, Wt = targets.shape[-2], targets.shape[-1]
        Hf, Wf = grid_hw
        Ah = _bilinear_matrix(Ht, Hf)                             # (Ht, Hf)
        Aw = _bilinear_matrix(Wt, Wf)                             # (Wt, Wf)
        targets = targets.astype(jnp.float32)

        if self.task_switch["spatial"] and mode != "test":
            losses = jnp.float32(0.0)
            if area_list is not None:
                # Bilinear upsample + sum over 5 channels of Dice*0.7 + BCEWithLogits*0.3,
                # fused so the upsampled prediction never hits HBM.
                losses = losses + pallas_interp_seg_loss(masks[:, :5], Ah, Aw, targets[:, :5])
            return losses
        return pallas_interpolate(masks, Ah, Aw)

    def forward(self, batched_inputs, targets, reference, ref_mask, area_list=None, mode="train"):
        # note: ' val' (leading space) matches the reference module verbatim.
        if mode == "train" or mode == " val":
            return self.forward_seg(batched_inputs, targets, reference, ref_mask,
                                    area_list, mode=mode)
        return self.forward_seg(batched_inputs, targets, reference, ref_mask, mode=mode)


# ------------------------------------------------------------------------------- main

if __name__ == "__main__":
    key = jax.random.PRNGKey(0)
    k_model, k_img, k_ref, k_mask, k_tgt = jax.random.split(key, 5)

    B, C, H, W = 2, 3, 32, 32
    NUM_MASKS = 5

    model = SEEMModelPallas(k_model, in_ch=C, img_size=H, patch=8, embed_dim=128,
                            num_masks=NUM_MASKS, size_divisibility=32)

    batched_inputs = jax.random.normal(k_img, (B, C, H, W), jnp.float32) * 50.0 + 100.0
    reference = jax.random.normal(k_ref, (B, C, H, W), jnp.float32) * 50.0 + 100.0
    ref_mask = (jax.random.uniform(k_mask, (B, NUM_MASKS, H, W)) > 0.5).astype(jnp.float32)
    targets = (jax.random.uniform(k_tgt, (B, NUM_MASKS, H, W)) > 0.5).astype(jnp.float32)
    area_list = [1.0] * NUM_MASKS  # non-None -> loss branch, matching the torch forward

    loss = model.forward(batched_inputs, targets, reference, ref_mask,
                         area_list=area_list, mode="train")
    loss = jax.block_until_ready(loss)

    pred = model.forward(batched_inputs, targets, reference, ref_mask, mode="test")
    pred = jax.block_until_ready(pred)

    assert loss.shape == () and jnp.isfinite(loss)
    assert pred.shape == (B, NUM_MASKS, H, W)
    print("KERNEL_OK")
</pallas_src>

<mosaic_0001>
module attributes {stable_mosaic.version = 11 : i64} {
  func.func @_backbone_kernel(%arg0: i32, %arg1: memref<64x192xbf16, #tpu.memory_space<vmem>>, %arg2: memref<192x128xbf16, #tpu.memory_space<vmem>>, %arg3: memref<1x128xf32, #tpu.memory_space<vmem>>, %arg4: memref<128x128xbf16, #tpu.memory_space<vmem>>, %arg5: memref<1x128xf32, #tpu.memory_space<vmem>>, %arg6: memref<128x128xbf16, #tpu.memory_space<vmem>>, %arg7: memref<1x128xf32, #tpu.memory_space<vmem>>, %arg8: memref<128x128xbf16, #tpu.memory_space<vmem>>, %arg9: memref<1x128xf32, #tpu.memory_space<vmem>>, %arg10: memref<64x128xbf16, #tpu.memory_space<vmem>>) attributes {dimension_semantics = [#tpu.dimension_semantics<parallel>], iteration_bounds = array<i64: 1>, scalar_prefetch = 0 : i64, scratch_operands = 0 : i64, tpu.core_type = #tpu.core_type<tc>, window_params = [{transform_indices = @transform_0, window_bounds = array<i64: 64, 192>}, {pipeline_mode = #tpu.pipeline_mode<synchronous>, transform_indices = @transform_1, window_bounds = array<i64: 192, 128>}, {pipeline_mode = #tpu.pipeline_mode<synchronous>, transform_indices = @transform_2, window_bounds = array<i64: 1, 128>}, {pipeline_mode = #tpu.pipeline_mode<synchronous>, transform_indices = @transform_3, window_bounds = array<i64: 128, 128>}, {pipeline_mode = #tpu.pipeline_mode<synchronous>, transform_indices = @transform_4, window_bounds = array<i64: 1, 128>}, {pipeline_mode = #tpu.pipeline_mode<synchronous>, transform_indices = @transform_5, window_bounds = array<i64: 128, 128>}, {pipeline_mode = #tpu.pipeline_mode<synchronous>, transform_indices = @transform_6, window_bounds = array<i64: 1, 128>}, {pipeline_mode = #tpu.pipeline_mode<synchronous>, transform_indices = @transform_7, window_bounds = array<i64: 128, 128>}, {pipeline_mode = #tpu.pipeline_mode<synchronous>, transform_indices = @transform_8, window_bounds = array<i64: 1, 128>}, {transform_indices = @transform_9, window_bounds = array<i64: 64, 128>}]} {
    %c0 = arith.constant 0 : index
    %c0_0 = arith.constant 0 : index
    %0 = vector.load %arg1[%c0, %c0_0] : memref<64x192xbf16, #tpu.memory_space<vmem>>, vector<64x192xbf16>
    %c0_1 = arith.constant 0 : index
    %c0_2 = arith.constant 0 : index
    %1 = vector.load %arg2[%c0_1, %c0_2] : memref<192x128xbf16, #tpu.memory_space<vmem>>, vector<192x128xbf16>
    %cst = arith.constant dense<0.000000e+00> : vector<64x128xf32>
    %2 = tpu.matmul %0, %1, %cst {dimension_numbers = #tpu.dot_dimension_numbers<[1], [0], [0], [1], [0, 0, 1, 1], [], []>} : vector<64x192xbf16>, vector<192x128xbf16>, vector<64x128xf32> -> vector<64x128xf32>
    %c0_3 = arith.constant 0 : index
    %c0_4 = arith.constant 0 : index
    %3 = vector.load %arg3[%c0_3, %c0_4] : memref<1x128xf32, #tpu.memory_space<vmem>>, vector<1x128xf32>
    %4 = vector.broadcast %3 : vector<1x128xf32> to vector<64x128xf32>
    %5 = arith.addf %2, %4 : vector<64x128xf32>
    %6 = arith.truncf %5 : vector<64x128xf32> to vector<64x128xbf16>
    %c0_5 = arith.constant 0 : index
    %c0_6 = arith.constant 0 : index
    %7 = vector.load %arg4[%c0_5, %c0_6] : memref<128x128xbf16, #tpu.memory_space<vmem>>, vector<128x128xbf16>
    %cst_7 = arith.constant dense<0.000000e+00> : vector<64x128xf32>
    %8 = tpu.matmul %6, %7, %cst_7 {dimension_numbers = #tpu.dot_dimension_numbers<[1], [0], [0], [1], [0, 0, 1, 1], [], []>} : vector<64x128xbf16>, vector<128x128xbf16>, vector<64x128xf32> -> vector<64x128xf32>
    %c0_8 = arith.constant 0 : index
    %c0_9 = arith.constant 0 : index
    %9 = vector.load %arg5[%c0_8, %c0_9] : memref<1x128xf32, #tpu.memory_space<vmem>>, vector<1x128xf32>
    %10 = vector.broadcast %9 : vector<1x128xf32> to vector<64x128xf32>
    %11 = arith.addf %8, %10 : vector<64x128xf32>
    %cst_10 = arith.constant 0.000000e+00 : f32
    %12 = vector.broadcast %cst_10 : f32 to vector<64x128xf32>
    %13 = arith.maximumf %11, %12 : vector<64x128xf32>
    %14 = arith.truncf %13 : vector<64x128xf32> to vector<64x128xbf16>
    %c0_11 = arith.constant 0 : index
    %c0_12 = arith.constant 0 : index
    %15 = vector.load %arg6[%c0_11, %c0_12] : memref<128x128xbf16, #tpu.memory_space<vmem>>, vector<128x128xbf16>
    %cst_13 = arith.constant dense<0.000000e+00> : vector<64x128xf32>
    %16 = tpu.matmul %14, %15, %cst_13 {dimension_numbers = #tpu.dot_dimension_numbers<[1], [0], [0], [1], [0, 0, 1, 1], [], []>} : vector<64x128xbf16>, vector<128x128xbf16>, vector<64x128xf32> -> vector<64x128xf32>
    %c0_14 = arith.constant 0 : index
    %c0_15 = arith.constant 0 : index
    %17 = vector.load %arg7[%c0_14, %c0_15] : memref<1x128xf32, #tpu.memory_space<vmem>>, vector<1x128xf32>
    %18 = vector.broadcast %17 : vector<1x128xf32> to vector<64x128xf32>
    %19 = arith.addf %16, %18 : vector<64x128xf32>
    %cst_16 = arith.constant 0.000000e+00 : f32
    %20 = vector.broadcast %cst_16 : f32 to vector<64x128xf32>
    %21 = arith.maximumf %19, %20 : vector<64x128xf32>
    %22 = arith.truncf %21 : vector<64x128xf32> to vector<64x128xbf16>
    %c0_17 = arith.constant 0 : index
    %c0_18 = arith.constant 0 : index
    %23 = vector.load %arg8[%c0_17, %c0_18] : memref<128x128xbf16, #tpu.memory_space<vmem>>, vector<128x128xbf16>
    %cst_19 = arith.constant dense<0.000000e+00> : vector<64x128xf32>
    %24 = tpu.matmul %22, %23, %cst_19 {dimension_numbers = #tpu.dot_dimension_numbers<[1], [0], [0], [1], [0, 0, 1, 1], [], []>} : vector<64x128xbf16>, vector<128x128xbf16>, vector<64x128xf32> -> vector<64x128xf32>
    %c0_20 = arith.constant 0 : index
    %c0_21 = arith.constant 0 : index
    %25 = vector.load %arg9[%c0_20, %c0_21] : memref<1x128xf32, #tpu.memory_space<vmem>>, vector<1x128xf32>
    %26 = vector.broadcast %25 : vector<1x128xf32> to vector<64x128xf32>
    %27 = arith.addf %24, %26 : vector<64x128xf32>
    %cst_22 = arith.constant 0.000000e+00 : f32
    %28 = vector.broadcast %cst_22 : f32 to vector<64x128xf32>
    %29 = arith.maximumf %27, %28 : vector<64x128xf32>
    %30 = arith.truncf %29 : vector<64x128xf32> to vector<64x128xbf16>
    %c0_23 = arith.constant 0 : index
    %c0_24 = arith.constant 0 : index
    %31 = vector.load %arg10[%c0_23, %c0_24] : memref<64x128xbf16, #tpu.memory_space<vmem>>, vector<64x128xbf16>
    tpu.vector_store %arg10[%c0_23, %c0_24], %30 {strides = array<i32>} : memref<64x128xbf16, #tpu.memory_space<vmem>>, vector<64x128xbf16>,
    return
  }
  func.func @transform_0(%arg0: i32) -> (i32, i32) {
    %c0_i32 = arith.constant 0 : i32
    %c0_i32_0 = arith.constant 0 : i32
    return %arg0, %c0_i32 : i32, i32
  }
  func.func @transform_1(%arg0: i32) -> (i32, i32) {
    %c0_i32 = arith.constant 0 : i32
    %c0_i32_0 = arith.constant 0 : i32
    %c0_i32_1 = arith.constant 0 : i32
    return %c0_i32, %c0_i32_0 : i32, i32
  }
  func.func @transform_2(%arg0: i32) -> (i32, i32) {
    %c0_i32 = arith.constant 0 : i32
    %c0_i32_0 = arith.constant 0 : i32
    %c0_i32_1 = arith.constant 0 : i32
    return %c0_i32, %c0_i32_0 : i32, i32
  }
  func.func @transform_3(%arg0: i32) -> (i32, i32) {
    %c0_i32 = arith.constant 0 : i32
    %c0_i32_0 = arith.constant 0 : i32
    %c0_i32_1 = arith.constant 0 : i32
    return %c0_i32, %c0_i32_0 : i32, i32
  }
  func.func @transform_4(%arg0: i32) -> (i32, i32) {
    %c0_i32 = arith.constant 0 : i32
    %c0_i32_0 = arith.constant 0 : i32
    %c0_i32_1 = arith.constant 0 : i32
    return %c0_i32, %c0_i32_0 : i32, i32
  }
  func.func @transform_5(%arg0: i32) -> (i32, i32) {
    %c0_i32 = arith.constant 0 : i32
    %c0_i32_0 = arith.constant 0 : i32
    %c0_i32_1 = arith.constant 0 : i32
    return %c0_i32, %c0_i32_0 : i32, i32
  }
  func.func @transform_6(%arg0: i32) -> (i32, i32) {
    %c0_i32 = arith.constant 0 : i32
    %c0_i32_0 = arith.constant 0 : i32
    %c0_i32_1 = arith.constant 0 : i32
    return %c0_i32, %c0_i32_0 : i32, i32
  }
  func.func @transform_7(%arg0: i32) -> (i32, i32) {
    %c0_i32 = arith.constant 0 : i32
    %c0_i32_0 = arith.constant 0 : i32
    %c0_i32_1 = arith.constant 0 : i32
    return %c0_i32, %c0_i32_0 : i32, i32
  }
  func.func @transform_8(%arg0: i32) -> (i32, i32) {
    %c0_i32 = arith.constant 0 : i32
    %c0_i32_0 = arith.constant 0 : i32
    %c0_i32_1 = arith.constant 0 : i32
    return %c0_i32, %c0_i32_0 : i32, i32
  }
  func.func @transform_9(%arg0: i32) -> (i32, i32) {
    %c0_i32 = arith.constant 0 : i32
    %c0_i32_0 = arith.constant 0 : i32
    return %arg0, %c0_i32 : i32, i32
  }
}

</mosaic_0001>

<bundles_post_ra>
// kernel: tpu_custom_call.1
= control target key start
LH: loop header
LB: loop body
LE: loop exit
PB: predicated region body
PF: predicated region fallthrough
CT: control target
= control target key end

     0   :  { %14 = vsyncpa [#allocation3], 0  ;;  %s1217_s0 = inlined_call_operand.hbm [shape: bf16[64,192], index: 0, kind: input, shape index: {}]   ;;  %s1218_s1 = inlined_call_operand.hbm [shape: bf16[192,128], index: 1, kind: input, shape index: {}]   ;;  %s1219_s2 = inlined_call_operand.vmem [shape: f32[1,128], index: 2, kind: input, shape index: {}]   ;;  %s1220_s3 = inlined_call_operand.hbm [shape: bf16[128,128], index: 3, kind: input, shape index: {}]   ;;  %s1221_s4 = inlined_call_operand.vmem [shape: f32[1,128], index: 4, kind: input, shape index: {}]   ;;  %s1222_s5 = inlined_call_operand.hbm [shape: bf16[128,128], index: 5, kind: input, shape index: {}]   ;;  %s1223_s6 = inlined_call_operand.vmem [shape: f32[1,128], index: 6, kind: input, shape index: {}]   ;;  %s1224_s7 = inlined_call_operand.hbm [shape: bf16[128,128], index: 7, kind: input, shape index: {}]   ;;  %s1225_s8 = inlined_call_operand.vmem [shape: f32[1,128], index: 8, kind: input, shape index: {}]   ;;  %s1226_s9 = inlined_call_operand.hbm [shape: bf16[64,128], index: 9, kind: output, shape index: {}]  }
   0x1   :  { %15 = vsyncpa [#allocation6], 0 }
   0x2   :  { %16 = vsyncpa [#allocation9], 0  ;;  %s35_s11 = sshll.u32 %s1218_s1, 4  ;;  %s36_s11 = int_to_ptr.hbm [resolvable:$true] %s35_s11 }
   0x3   :  { %17 = vsyncpa [#allocation4], 0  ;;  %s1108_s12 = smov [#allocation5]   ;;  %s65_s16 = sshll.u32 %s1222_s5, 4  ;;  %s66_s16 = int_to_ptr.hbm [resolvable:$true] %s65_s16 }
   0x4   :  { %s37_s13 = sshll.u32 %s1108_s12, 4  ;;  %s1109_s17 = smov 64   ;;  %s38_s13 = int_to_ptr.vmem [resolvable:$true] %s37_s13 }
   0x5   :  { %s1110_s18 = smov 4   ;;  %s1111_s19 = smov [#allocation8]  }
   0x6   :  { %43 = dma.hbm_to_vmem [thread:$0]  %s36_s11, 1536, %s38_s13, [#allocation6], %s1109_s17, %s1109_s17, %s1110_s18  }
   0x7   :  { %s67_s20 = sshll.u32 %s1111_s19, 4  ;;  %s22_s22 = sshll.u32 %s1217_s0, 4  ;;  %s68_s20 = int_to_ptr.vmem [resolvable:$true] %s67_s20  ;;  %s23_s22 = int_to_ptr.hbm [resolvable:$true] %s22_s22 }
   0x8   :  { %73 = dma.hbm_to_vmem [thread:$0]  %s66_s16, 1024, %s68_s20, [#allocation9], %s1109_s17, %s1109_s17, %s1110_s18  }
   0x9   :  { %s1112_s5 = smov [#allocation2]   ;;  %s50_s26 = sshll.u32 %s1220_s3, 4  ;;  %s51_s26 = int_to_ptr.hbm [resolvable:$true] %s50_s26 }
   0xa   :  { %s24_s23 = sshll.u32 %s1112_s5, 4  ;;  %s1113_s27 = smov 128   ;;  %s25_s23 = int_to_ptr.vmem [resolvable:$true] %s24_s23 }
   0xb   :  { %s1114_s28 = smov 8   ;;  %s1115_s29 = smov [#allocation7]  }
   0xc   :  { %30 = dma.hbm_to_vmem [thread:$0]  %s23_s22, 1024, %s25_s23, [#allocation3], %s1113_s27, %s1113_s27, %s1114_s28  }
   0xd   :  { %s52_s30 = sshll.u32 %s1115_s29, 4  ;;  %s80_s11 = sshll.u32 %s1224_s7, 4  ;;  %s53_s30 = int_to_ptr.vmem [resolvable:$true] %s52_s30  ;;  %s81_s11 = int_to_ptr.hbm [resolvable:$true] %s80_s11 }
   0xe   :  { %58 = dma.hbm_to_vmem [thread:$0]  %s51_s26, 1024, %s53_s30, [#allocation6], %s1109_s17, %s1109_s17, %s1110_s18  }
   0xf   :  { %s1116_s12 = smov [#allocation10]  }
  0x10   :  { %s82_s13 = sshll.u32 %s1116_s12, 4  ;;  %s83_s13 = int_to_ptr.vmem [resolvable:$true] %s82_s13 }
  0x11   :  { %88 = dma.hbm_to_vmem [thread:$0]  %s81_s11, 1024, %s83_s13, [#allocation9], %s1109_s17, %s1109_s17, %s1110_s18  }
  0x12   :  { %1100 = dma.done.wait [#allocation3], 1024  }
  0x13   :  { %1101 = vsyncadd [#allocation3], 4294966272 }
  0x14   :  { %1102 = dma.done.wait [#allocation6], 2560  }
  0x15   :  { %1103 = vsyncadd [#allocation6], 4294964736 }
  0x16   :  { %1104 = dma.done.wait [#allocation9], 2048  }
  0x17   :  { %1105 = vsyncadd [#allocation9], 4294965248  ;;  %v886_v0 = vld [vmem:[#allocation5 + $0x38] sm:$0xff]  ;;  %v885_v2 = vld [vmem:[#allocation5 + $0x30] sm:$0xff]  ;;  %vm256_vm0 = vcmask 523264   ;;  %s676_s1 = sshll.u32 %s1226_s9, 4  ;;  %s677_s1 = int_to_ptr.hbm [resolvable:$true] %s676_s1 }
  0x18   :  { %v890_v1 = vld [vmem:[#allocation5 + $0x58] sm:$0xff]  ;;  %269 = vmatpush.bf16.msra.mxu0 %v886_v0  ;;  %v889_v3 = vld [vmem:[#allocation5 + $0x50] sm:$0xff]  ;;  %v884_v4 = vld [vmem:[#allocation5 + $0x28] sm:$0xff] }
  0x19   :  { %302 = vmatpush.bf16.msra.mxu1 %v890_v1  ;;  %938 = vmatpush.bf16.msra.mxu2 %v890_v1  ;;  %v888_v5 = vld [vmem:[#allocation5 + $0x48] sm:$0xff]  ;;  %v883_v6 = vld [vmem:[#allocation5 + $0x20] sm:$0xff]  ;;  %v882_v10 = vld [vmem:[#allocation5 + $0x18] sm:$0xff] }
  0x1a   :  { %v887_v7 = vld [vmem:[#allocation5 + $0x40] sm:$0xff]  ;;  %v695_v9 = vld [vmem:[#allocation2 + $0x8] sm:$0xf0]  ;;  %v881_v14 = vld [vmem:[#allocation5 + $0x10] sm:$0xff] }
  0x1b   :  { %v871_v8 = vld [vmem:[#allocation2 + $0x4] sm:$0xf]  ;;  %v711_v13 = vld [vmem:[#allocation2 + $0x28] sm:$0xf0]  ;;  %v693_v18 = vld [vmem:[#allocation2] sm:$0xf] }
  0x1c   :  { %270 = vmatpush.bf16.msra.mxu0 %v885_v2  ;;  %v698_v11 = vor.u32 %v871_v8, %v695_v9  ;;  %v875_v12 = vld [vmem:[#allocation2 + $0x24] sm:$0xf]  ;;  %v880_v16 = vld [vmem:[#allocation5 + $0x8] sm:$0xff]  ;;  %v873_v20 = vld [vmem:[#allocation2 + $0x14] sm:$0xf] }
  0x1d   :  { %303 = vmatpush.bf16.msra.mxu1 %v889_v3  ;;  %939 = vmatpush.bf16.msra.mxu2 %v889_v3  ;;  %v714_v15 = vor.u32 %v875_v12, %v711_v13  ;;  %v879_v17 = vld [vmem:[#allocation5] sm:$0xff]  ;;  %v872_v19 = vld [vmem:[#allocation2 + $0x4] sm:$0xf0]  ;;  %v703_v21 = vld [vmem:[#allocation2 + $0x18] sm:$0xf0] }
  0x1e   :  { %v694_v22 = vor.u32 %v872_v19, %v693_v18  ;;  %v706_v23 = vor.u32 %v873_v20, %v703_v21  ;;  %v877_v24 = vld [vmem:[#allocation2 + $0x34] sm:$0xf]  ;;  %v719_v25 = vld [vmem:[#allocation2 + $0x38] sm:$0xf0]  ;;  %v701_v27 = vld [vmem:[#allocation2 + $0x10] sm:$0xf] }
  0x1f   :  { %v722_v26 = vor.u32 %v877_v24, %v719_v25  ;;  %v874_v28 = vld [vmem:[#allocation2 + $0x14] sm:$0xf0]  ;;  %v897_v31 = vld [vmem:[#allocation7 + $0x30] sm:$0xff]  ;;  %v896_v32 = vld [vmem:[#allocation7 + $0x28] sm:$0xff] }
  0x20   :  { %271 = vmatpush.bf16.msra.mxu0 %v884_v4  ;;  %v702_v29 = vor.u32 %v874_v28, %v701_v27  ;;  %v898_v30 = vld [vmem:[#allocation7 + $0x38] sm:$0xff]  ;;  %v709_v33 = vld [vmem:[#allocation2 + $0x20] sm:$0xf]  ;;  %v876_v34 = vld [vmem:[#allocation2 + $0x24] sm:$0xf0] }
  0x21   :  { %304 = vmatpush.bf16.msra.mxu1 %v888_v5  ;;  %940 = vmatpush.bf16.msra.mxu2 %v888_v5  ;;  %v710_v35 = vor.u32 %v876_v34, %v709_v33  ;;  %v717_v36 = vld [vmem:[#allocation2 + $0x30] sm:$0xf]  ;;  %v878_v37 = vld [vmem:[#allocation2 + $0x34] sm:$0xf0]  ;;  %v895_v39 = vld [vmem:[#allocation7 + $0x20] sm:$0xff] }
  0x22   :  { %v718_v38 = vor.u32 %v878_v37, %v717_v36  ;;  %v894_v40 = vld [vmem:[#allocation7 + $0x18] sm:$0xff]  ;;  %v893_v41 = vld [vmem:[#allocation7 + $0x10] sm:$0xff]  ;;  %v892_v42 = vld [vmem:[#allocation7 + $0x8] sm:$0xff] }
  0x23   :  { %v891_v43 = vld [vmem:[#allocation7] sm:$0xff]  ;;  %v906_v0 = vld [vmem:[#allocation8 + $0x38] sm:$0xff]  ;;  %v905_v2 = vld [vmem:[#allocation8 + $0x30] sm:$0xff] }
  0x24   :  { %272 = vmatpush.bf16.msra.mxu0 %v883_v6  ;;  %v952_v46 = vld [vmem:[%s1219_s2] ss:$0 sm:$0xff]  ;;  %508 = vmatpush.bf16.msra.mxu3 %v906_v0  ;;  %v904_v3 = vld [vmem:[#allocation8 + $0x28] sm:$0xff]  ;;  %v902_v21 = vld [vmem:[#allocation8 + $0x18] sm:$0xff] }
  0x25   :  { %305 = vmatpush.bf16.msra.mxu1 %v887_v7  ;;  %941 = vmatpush.bf16.msra.mxu2 %v887_v7  ;;  %v903_v8 = vld [vmem:[#allocation8 + $0x20] sm:$0xff] }
  0x26   :  { %v899_v24 = vld [vmem:[#allocation8] sm:$0xff] }
  0x28   :  { %273 = vmatpush.bf16.msra.mxu0 %v882_v10  ;;  %771 = vmatmul.msk.bf16.vlgmr.msra.gmra.mxu1 %vm256_vm0, %v698_v11 }
  0x29   :  { %773 = vmatmul.msk.bf16.vlgmr.msra.gmra.mxu2 %vm256_vm0, %v714_v15  ;;  %509 = vmatpush.bf16.msra.mxu3 %v905_v2 }
  0x2a   :  { %399 = vmatpush.bf16.msrb.mxu2 %v898_v30 }
  0x2c   :  { %274 = vmatpush.bf16.msra.mxu0 %v881_v14 }
  0x2d   :  { %510 = vmatpush.bf16.msra.mxu3 %v904_v3 }
  0x2e   :  { %400 = vmatpush.bf16.msrb.mxu2 %v897_v31 }
  0x30   :  { %275 = vmatpush.bf16.msra.mxu0 %v880_v16 }
  0x31   :  { %511 = vmatpush.bf16.msra.mxu3 %v903_v8 }
  0x32   :  { %401 = vmatpush.bf16.msrb.mxu2 %v896_v32 }
  0x34   :  { %276 = vmatpush.bf16.msra.mxu0 %v879_v17 }
  0x35   :  { %512 = vmatpush.bf16.msra.mxu3 %v902_v21 }
  0x36   :  { %402 = vmatpush.bf16.msrb.mxu2 %v895_v39 }
  0x37   :  { %277 = vmatmul.bf16.vlgmr.msra.gmra.mxu0 %v694_v22  ;;  %v901_v22 = vld [vmem:[#allocation8 + $0x10] sm:$0xff] }
  0x38   :  { %772 = vmatmul.msk.bf16.gmra.mxu1 %vm256_vm0, %v706_v23  ;;  %v900_v23 = vld [vmem:[#allocation8 + $0x8] sm:$0xff] }
  0x39   :  { %774 = vmatmul.msk.bf16.gmra.mxu2 %vm256_vm0, %v722_v26  ;;  %513 = vmatpush.bf16.msra.mxu3 %v901_v22  ;;  %v953_v26 = vld [vmem:[%s1221_s4] ss:$0 sm:$0xff] }
  0x3a   :  { %403 = vmatpush.bf16.msrb.mxu2 %v894_v40  ;;  %v914_v40 = vld [vmem:[#allocation10 + $0x38] sm:$0xff] }
  0x3b   :  { %617 = vmatpush.bf16.msrb.mxu1 %v914_v40 }
  0x3d   :  { %514 = vmatpush.bf16.msra.mxu3 %v900_v23 }
  0x3e   :  { %404 = vmatpush.bf16.msrb.mxu2 %v893_v41 }
  0x41   :  { %515 = vmatpush.bf16.msra.mxu3 %v899_v24 }
  0x42   :  { %405 = vmatpush.bf16.msrb.mxu2 %v892_v42  ;;  %v913_v42 = vld [vmem:[#allocation10 + $0x30] sm:$0xff] }
  0x43   :  { %618 = vmatpush.bf16.msrb.mxu1 %v913_v42 }
  0x46   :  { %406 = vmatpush.bf16.msrb.mxu2 %v891_v43  ;;  %v912_v43 = vld [vmem:[#allocation10 + $0x28] sm:$0xff] }
  0x47   :  { %282 = vmatmul.bf16.gmra.mxu0 %v702_v29  ;;  %619 = vmatpush.bf16.msrb.mxu1 %v912_v43 }
  0x57   :  { %287 = vmatmul.bf16.gmra.mxu0 %v710_v35 }
  0x67   :  { %292 = vmatmul.bf16.gmra.mxu0 %v718_v38 }
  0xa5   :  { %v307_v44 = vpop.f32.mrf.mxu1 }
  0xac   :  { %v317_v62 = vpop.f32.mrf.mxu2 }
  0xad   :  { %v309_v47 = vpop.f32.mrf.mxu1 }
  0xb4   :  { %v278_v45 = vpop.f32.mrf.mxu0  ;;  %v319_v4 = vpop.f32.mrf.mxu2 }
  0xb5   :  { %v279_v48 = vadd.f32 %v952_v46, %v278_v45  ;;  %v312_v54 = vpop.f32.mrf.mxu1 }
  0xb7   :  { %v308_v51 = vadd.f32 %v307_v44, %v279_v48 }
  0xbc   :  { %v280_v49 = vpop.f32.mrf.mxu0  ;;  %v322_v12 = vpop.f32.mrf.mxu2 }
  0xbd   :  { %v281_v50 = vadd.f32 %v952_v46, %v280_v49  ;;  %v314_v59 = vpop.f32.mrf.mxu1 }
  0xbf   :  { %v310_v52 = vadd.f32 %v309_v47, %v281_v50  ;;  %v911_v47 = vld [vmem:[#allocation10 + $0x20] sm:$0xff] }
  0xc0   :  { %620 = vmatpush.bf16.msrb.mxu1 %v911_v47 }
  0xc1   :  { %v327_v53 = vpack.c.bf16 %v310_v52, %v308_v51  ;;  %v910_v51 = vld [vmem:[#allocation10 + $0x18] sm:$0xff] }
  0xc3   :  { %407 = vmatmul.bf16.vlgmr.msrb.gmra.mxu2 %v327_v53 }
  0xc4   :  { %v283_v55 = vpop.f32.mrf.mxu0  ;;  %v324_v17 = vpop.f32.mrf.mxu2  ;;  %621 = vmatpush.bf16.msrb.mxu1 %v910_v51 }
  0xc5   :  { %v284_v56 = vadd.f32 %v952_v46, %v283_v55 }
  0xc7   :  { %v313_v60 = vadd.f32 %v312_v54, %v284_v56 }
  0xcc   :  { %v285_v57 = vpop.f32.mrf.mxu0 }
  0xcd   :  { %v286_v58 = vadd.f32 %v952_v46, %v285_v57 }
  0xcf   :  { %v315_v61 = vadd.f32 %v314_v59, %v286_v58  ;;  %v909_v59 = vld [vmem:[#allocation10 + $0x10] sm:$0xff] }
  0xd0   :  { %622 = vmatpush.bf16.msrb.mxu1 %v909_v59 }
  0xd1   :  { %v328_v63 = vpack.c.bf16 %v315_v61, %v313_v60  ;;  %v908_v60 = vld [vmem:[#allocation10 + $0x8] sm:$0xff]  ;;  %v907_v61 = vld [vmem:[#allocation10] sm:$0xff] }
  0xd3   :  { %412 = vmatmul.bf16.gmra.mxu2 %v328_v63  ;;  %v954_v63 = vld [vmem:[%s1223_s6] ss:$0 sm:$0xff] }
  0xd4   :  { %v288_v1 = vpop.f32.mrf.mxu0  ;;  %623 = vmatpush.bf16.msrb.mxu1 %v908_v60 }
  0xd5   :  { %v289_v5 = vadd.f32 %v952_v46, %v288_v1 }
  0xd7   :  { %v318_v9 = vadd.f32 %v317_v62, %v289_v5 }
  0xd8   :  { %624 = vmatpush.bf16.msrb.mxu1 %v907_v61 }
  0xdc   :  { %v290_v6 = vpop.f32.mrf.mxu0 }
  0xdd   :  { %v291_v7 = vadd.f32 %v952_v46, %v290_v6 }
  0xdf   :  { %v320_v10 = vadd.f32 %v319_v4, %v291_v7 }
  0xe1   :  { %v329_v11 = vpack.c.bf16 %v320_v10, %v318_v9 }
  0xe3   :  { %417 = vmatmul.bf16.gmra.mxu2 %v329_v11 }
  0xe4   :  { %v293_v13 = vpop.f32.mrf.mxu0 }
  0xe5   :  { %v294_v14 = vadd.f32 %v952_v46, %v293_v13 }
  0xe7   :  { %v323_v18 = vadd.f32 %v322_v12, %v294_v14 }
  0xec   :  { %v295_v15 = vpop.f32.mrf.mxu0 }
  0xed   :  { %v296_v16 = vadd.f32 %v952_v46, %v295_v15 }
  0xef   :  { %v325_v19 = vadd.f32 %v324_v17, %v296_v16 }
  0xf1   :  { %v330_v20 = vpack.c.bf16 %v325_v19, %v323_v18 }
  0xf3   :  { %422 = vmatmul.bf16.gmra.mxu2 %v330_v20 }
 0x146   :  { %v408_v25 = vpop.f32.mrf.mxu2 }
 0x147   :  { %v409_v27 = vadd.f32 %v953_v26, %v408_v25 }
 0x149   :  { %v428_v30 = vmax.f32 %v409_v27, 0.0 }
 0x14e   :  { %v410_v28 = vpop.f32.mrf.mxu2 }
 0x14f   :  { %v411_v29 = vadd.f32 %v953_v26, %v410_v28  ;;  %v955_v28 = vld [vmem:[%s1225_s8] ss:$0 sm:$0xff]  ;;  %s1117_s8 = smov [#allocation11]  }
 0x150   :  { %s674_s19 = sshll.u32 %s1117_s8, 4  ;;  %s675_s19 = int_to_ptr.vmem [resolvable:$true] %s674_s19 }
 0x151   :  { %v429_v31 = vmax.f32 %v411_v29, 0.0 }
 0x153   :  { %v436_v32 = vpack.c.bf16 %v429_v31, %v428_v30 }
 0x155   :  { %516 = vmatmul.bf16.vlgmr.msra.gmra.mxu3 %v436_v32 }
 0x156   :  { %v413_v33 = vpop.f32.mrf.mxu2 }
 0x157   :  { %v414_v34 = vadd.f32 %v953_v26, %v413_v33 }
 0x159   :  { %v430_v37 = vmax.f32 %v414_v34, 0.0 }
 0x15e   :  { %v415_v35 = vpop.f32.mrf.mxu2 }
 0x15f   :  { %v416_v36 = vadd.f32 %v953_v26, %v415_v35 }
 0x161   :  { %v431_v38 = vmax.f32 %v416_v36, 0.0 }
 0x163   :  { %v437_v39 = vpack.c.bf16 %v431_v38, %v430_v37 }
 0x165   :  { %521 = vmatmul.bf16.gmra.mxu3 %v437_v39 }
 0x166   :  { %v418_v41 = vpop.f32.mrf.mxu2 }
 0x167   :  { %v419_v44 = vadd.f32 %v953_v26, %v418_v41 }
 0x169   :  { %v432_v48 = vmax.f32 %v419_v44, 0.0 }
 0x16e   :  { %v420_v45 = vpop.f32.mrf.mxu2 }
 0x16f   :  { %v421_v46 = vadd.f32 %v953_v26, %v420_v45 }
 0x171   :  { %v433_v49 = vmax.f32 %v421_v46, 0.0 }
 0x173   :  { %v438_v50 = vpack.c.bf16 %v433_v49, %v432_v48 }
 0x175   :  { %526 = vmatmul.bf16.gmra.mxu3 %v438_v50 }
 0x176   :  { %v423_v52 = vpop.f32.mrf.mxu2 }
 0x177   :  { %v424_v53 = vadd.f32 %v953_v26, %v423_v52 }
 0x179   :  { %v434_v56 = vmax.f32 %v424_v53, 0.0 }
 0x17e   :  { %v425_v54 = vpop.f32.mrf.mxu2 }
 0x17f   :  { %v426_v55 = vadd.f32 %v953_v26, %v425_v54 }
 0x181   :  { %v435_v57 = vmax.f32 %v426_v55, 0.0 }
 0x183   :  { %v439_v58 = vpack.c.bf16 %v435_v57, %v434_v56 }
 0x185   :  { %531 = vmatmul.bf16.gmra.mxu3 %v439_v58 }
 0x1d8   :  { %v517_v62 = vpop.f32.mrf.mxu3 }
 0x1d9   :  { %v518_v0 = vadd.f32 %v954_v63, %v517_v62 }
 0x1db   :  { %v537_v3 = vmax.f32 %v518_v0, 0.0 }
 0x1e0   :  { %v519_v1 = vpop.f32.mrf.mxu3 }
 0x1e1   :  { %v520_v2 = vadd.f32 %v954_v63, %v519_v1 }
 0x1e3   :  { %v538_v4 = vmax.f32 %v520_v2, 0.0 }
 0x1e5   :  { %v545_v5 = vpack.c.bf16 %v538_v4, %v537_v3 }
 0x1e7   :  { %625 = vmatmul.bf16.vlgmr.msrb.gmra.mxu1 %v545_v5 }
 0x1e8   :  { %v522_v6 = vpop.f32.mrf.mxu3 }
 0x1e9   :  { %v523_v7 = vadd.f32 %v954_v63, %v522_v6 }
 0x1eb   :  { %v539_v10 = vmax.f32 %v523_v7, 0.0 }
 0x1f0   :  { %v524_v8 = vpop.f32.mrf.mxu3 }
 0x1f1   :  { %v525_v9 = vadd.f32 %v954_v63, %v524_v8 }
 0x1f3   :  { %v540_v11 = vmax.f32 %v525_v9, 0.0 }
 0x1f5   :  { %v546_v12 = vpack.c.bf16 %v540_v11, %v539_v10 }
 0x1f7   :  { %630 = vmatmul.bf16.gmra.mxu1 %v546_v12 }
 0x1f8   :  { %v527_v13 = vpop.f32.mrf.mxu3 }
 0x1f9   :  { %v528_v14 = vadd.f32 %v954_v63, %v527_v13 }
 0x1fb   :  { %v541_v17 = vmax.f32 %v528_v14, 0.0 }
 0x200   :  { %v529_v15 = vpop.f32.mrf.mxu3 }
 0x201   :  { %v530_v16 = vadd.f32 %v954_v63, %v529_v15 }
 0x203   :  { %v542_v18 = vmax.f32 %v530_v16, 0.0 }
 0x205   :  { %v547_v19 = vpack.c.bf16 %v542_v18, %v541_v17 }
 0x207   :  { %635 = vmatmul.bf16.gmra.mxu1 %v547_v19 }
 0x208   :  { %v532_v20 = vpop.f32.mrf.mxu3 }
 0x209   :  { %v533_v21 = vadd.f32 %v954_v63, %v532_v20 }
 0x20b   :  { %v543_v24 = vmax.f32 %v533_v21, 0.0 }
 0x210   :  { %v534_v22 = vpop.f32.mrf.mxu3 }
 0x211   :  { %v535_v23 = vadd.f32 %v954_v63, %v534_v22 }
 0x213   :  { %v544_v25 = vmax.f32 %v535_v23, 0.0 }
 0x215   :  { %v548_v26 = vpack.c.bf16 %v544_v25, %v543_v24 }
 0x217   :  { %640 = vmatmul.bf16.gmra.mxu1 %v548_v26 }
 0x264   :  { %v626_v27 = vpop.f32.mrf.mxu1 }
 0x265   :  { %v627_v29 = vadd.f32 %v955_v28, %v626_v27 }
 0x267   :  { %v646_v32 = vmax.f32 %v627_v29, 0.0 }
 0x26c   :  { %v628_v30 = vpop.f32.mrf.mxu1 }
 0x26d   :  { %v629_v31 = vadd.f32 %v955_v28, %v628_v30 }
 0x26f   :  { %v647_v33 = vmax.f32 %v629_v31, 0.0 }
 0x271   :  { %v918_v34 = vpack.c.bf16 %v647_v33, %v646_v32 }
 0x273   :  { %919 = vst [vmem:[#allocation11] sm:$0xff] %v918_v34  }
 0x274   :  { %v631_v35 = vpop.f32.mrf.mxu1 }
 0x275   :  { %v632_v36 = vadd.f32 %v955_v28, %v631_v35 }
 0x277   :  { %v648_v39 = vmax.f32 %v632_v36, 0.0 }
 0x27c   :  { %v633_v37 = vpop.f32.mrf.mxu1 }
 0x27d   :  { %v634_v38 = vadd.f32 %v955_v28, %v633_v37 }
 0x27f   :  { %v649_v40 = vmax.f32 %v634_v38, 0.0 }
 0x281   :  { %v923_v41 = vpack.c.bf16 %v649_v40, %v648_v39 }
 0x283   :  { %935 = vst [vmem:[#allocation11 + $0x8] sm:$0xff] %v923_v41  }
 0x284   :  { %v636_v42 = vpop.f32.mrf.mxu1 }
 0x285   :  { %v637_v43 = vadd.f32 %v955_v28, %v636_v42 }
 0x287   :  { %v650_v46 = vmax.f32 %v637_v43, 0.0 }
 0x28c   :  { %v638_v44 = vpop.f32.mrf.mxu1 }
 0x28d   :  { %v639_v45 = vadd.f32 %v955_v28, %v638_v44 }
 0x28f   :  { %v651_v47 = vmax.f32 %v639_v45, 0.0 }
 0x291   :  { %v928_v48 = vpack.c.bf16 %v651_v47, %v650_v46 }
 0x293   :  { %936 = vst [vmem:[#allocation11 + $0x10] sm:$0xff] %v928_v48  }
 0x294   :  { %v641_v49 = vpop.f32.mrf.mxu1 }
 0x295   :  { %v642_v50 = vadd.f32 %v955_v28, %v641_v49 }
 0x297   :  { %v652_v53 = vmax.f32 %v642_v50, 0.0 }
 0x29c   :  { %v643_v51 = vpop.f32.mrf.mxu1 }
 0x29d   :  { %v644_v52 = vadd.f32 %v955_v28, %v643_v51 }
 0x29f   :  { %v653_v54 = vmax.f32 %v644_v52, 0.0 }
 0x2a1   :  { %v933_v55 = vpack.c.bf16 %v653_v54, %v652_v53 }
 0x2a3   :  { %937 = vst [vmem:[#allocation11 + $0x18] sm:$0xff] %v933_v55  }
 0x2a4   :  { %682 = dma.vmem_to_hbm [thread:$0]  %s675_s19, 512, %s677_s1, [#allocation4], %s1109_s17, %s1109_s17, %s1110_s18  }
 0x2a5   :  { %1106 = dma.done.wait [#allocation4], 512  }
 0x2a6   :  { %1107 = vsyncadd [#allocation4], 4294966784 }
 0x2a7   :  { %687 = vsyncpa [#allocation3], 1 }
 0x2a8   :  { %688 = vsyncpa [#allocation6], 1 }
 0x2a9   :  { %689 = vsyncpa [#allocation9], 1 }
 0x2aa   :  { %690 = vsyncpa [#allocation4], 1 }

</bundles_post_ra>
